<compile_context>
chip_gen: v6e
topology: v6e:2x2x1
jax: 0.10.0
libtpu: 0.0.40
codegen_flags: <defaults>
</compile_context>

<pallas_src>
import functools

import jax
import jax.numpy as jnp
from jax.experimental import pallas as pl
from jax.experimental.pallas import tpu as pltpu

BN_EPS = 1e-5
NEG_SLOPE = 0.2
Z_DIM = 64
LANE = 128


def _round_up(n, m):
    return ((n + m - 1) // m) * m


def _vae_kernel(
    x_ref, eps_ref,
    w1_ref, g1_ref, be1_ref,        # encoder Linear(in_pad,256) + BN(256)  (bias folded out)
    w2_ref, g2_ref, be2_ref,        # encoder Linear(256,128)   + BN(128)  (bias folded out)
    wmulv_ref, bmulv_ref,           # fused [fc_mu | fc_lv]: 128 -> 128
    wd1_ref, gd1_ref, bed1_ref,     # decoder Linear(64,64 ->128 pad) + BN  (bias folded out)
    wd2_ref, gd2_ref, bed2_ref,     # decoder Linear(64,64 ->128x128 pad) + BN
    wd3_ref, bd3_ref,               # decoder Linear(64,out ->128xout_pad)
    xr_ref, mulv_ref,               # outputs: padded reconstruction, packed [mu | log_var]
):
    inv_b = 1.0 / x_ref.shape[0]    # static batch size

    def matmul(h, w_ref):
        # bf16 operands on the MXU, f32 accumulation.
        return jnp.dot(h.astype(jnp.bfloat16), w_ref[...],
                       preferred_element_type=jnp.float32)

    def batchnorm(h, g_ref, beta_ref):
        # Training-mode BatchNorm1d: one-pass batch moments (biased variance),
        # gamma folded into the rsqrt scale.  The preceding Linear bias is
        # dropped since (h+b) - mean(h+b) == h - mean(h).
        s1 = jnp.sum(h, axis=0, keepdims=True)
        s2 = jnp.sum(h * h, axis=0, keepdims=True)
        m = s1 * inv_b
        v = jnp.maximum(s2 * inv_b - m * m, 0.0)   # clamp E[x^2]-m^2 >= 0
        scale = g_ref[...] * jax.lax.rsqrt(v + BN_EPS)
        return h * scale + (beta_ref[...] - m * scale)

    def leaky_relu(h):
        return jnp.where(h > 0, h, NEG_SLOPE * h)

    x = x_ref[...]

    # ---- encoder ----
    h = leaky_relu(batchnorm(matmul(x, w1_ref), g1_ref, be1_ref))
    h = leaky_relu(batchnorm(matmul(h, w2_ref), g2_ref, be2_ref))

    # ---- fused mu / log_var projection: single 128-lane-wide matmul ----
    mulv = matmul(h, wmulv_ref) + bmulv_ref[...]
    mulv_ref[...] = mulv                 # lane-dense (B, 128) output slab
    mu = mulv[:, :Z_DIM]
    log_var = mulv[:, Z_DIM:]

    # ---- reparameterize: z = mu + (randn * 0.001) * exp(0.5 * log_var) ----
    z = mu + eps_ref[...] * jnp.exp(0.5 * log_var)

    # ---- decoder (hidden width padded to 128 lanes with zero rows/cols) ----
    d = leaky_relu(batchnorm(matmul(z, wd1_ref), gd1_ref, bed1_ref))
    d = leaky_relu(batchnorm(matmul(d, wd2_ref), gd2_ref, bed2_ref))
    xr_ref[...] = matmul(d, wd3_ref) + bd3_ref[...]


def init_params(key, input_dim, output_dim):
    """PyTorch-style init (U[-1/sqrt(fan_in), 1/sqrt(fan_in)]); weights stored [in, out]."""
    dims = [
        ("enc1", input_dim, 256, True),
        ("enc2", 256, 128, True),
        ("fc_mu", 128, Z_DIM, False),
        ("fc_lv", 128, Z_DIM, False),
        ("dec1", Z_DIM, 64, True),
        ("dec2", 64, 64, True),
        ("dec3", 64, output_dim, False),
    ]
    params = {}
    for name, fan_in, fan_out, has_bn in dims:
        key, kw, kb = jax.random.split(key, 3)
        bound = 1.0 / jnp.sqrt(float(fan_in))
        params[name + "_w"] = jax.random.uniform(
            kw, (fan_in, fan_out), jnp.float32, -bound, bound)
        params[name + "_b"] = jax.random.uniform(
            kb, (1, fan_out), jnp.float32, -bound, bound)
        if has_bn:
            params[name + "_g"] = jnp.ones((1, fan_out), jnp.float32)
            params[name + "_beta"] = jnp.zeros((1, fan_out), jnp.float32)
    return params


def _pad_to(a, shape, fill=0.0):
    out = jnp.full(shape, fill, a.dtype)
    return out.at[tuple(slice(0, s) for s in a.shape)].set(a)


def pack_params(params, input_dim, output_dim):
    """One-time repack for the kernel: pad to 128-lane slabs, fuse the mu/log_var
    heads, drop the pre-BN Linear biases, cast matmul weights to bf16."""
    in_pad = _round_up(input_dim, LANE)
    out_pad = _round_up(output_dim, LANE)
    dec_pad = _round_up(64, LANE)          # 128

    bf = lambda a: a.astype(jnp.bfloat16)
    return {
        # encoder (pre-BN biases are algebraically dead -> dropped)
        "w1": bf(_pad_to(params["enc1_w"], (in_pad, 256))),
        "g1": params["enc1_g"], "be1": params["enc1_beta"],
        "w2": bf(params["enc2_w"]),
        "g2": params["enc2_g"], "be2": params["enc2_beta"],
        # fused [mu | log_var] projection
        "wmulv": bf(jnp.concatenate([params["fc_mu_w"], params["fc_lv_w"]], axis=1)),
        "bmulv": jnp.concatenate([params["fc_mu_b"], params["fc_lv_b"]], axis=1),
        # decoder, hidden width padded 64 -> 128 with zero rows/cols
        "wd1": bf(_pad_to(params["dec1_w"], (Z_DIM, dec_pad))),
        "gd1": _pad_to(params["dec1_g"], (1, dec_pad), fill=1.0),
        "bed1": _pad_to(params["dec1_beta"], (1, dec_pad)),
        "wd2": bf(_pad_to(params["dec2_w"], (dec_pad, dec_pad))),
        "gd2": _pad_to(params["dec2_g"], (1, dec_pad), fill=1.0),
        "bed2": _pad_to(params["dec2_beta"], (1, dec_pad)),
        "wd3": bf(_pad_to(params["dec3_w"], (dec_pad, out_pad))),
        "bd3": _pad_to(params["dec3_b"], (1, out_pad)),
    }


@functools.partial(jax.jit, static_argnames=("output_dim",))
def vae_forward(x, eps, packed, output_dim):
    B, input_dim = x.shape
    in_pad = packed["w1"].shape[0]
    out_pad = packed["wd3"].shape[1]

    # Lane-pad the input in the wrapper (layout plumbing, not compute).
    if input_dim < in_pad:
        x = jnp.pad(x, ((0, 0), (0, in_pad - input_dim)))

    args = [
        x, eps,
        packed["w1"], packed["g1"], packed["be1"],
        packed["w2"], packed["g2"], packed["be2"],
        packed["wmulv"], packed["bmulv"],
        packed["wd1"], packed["gd1"], packed["bed1"],
        packed["wd2"], packed["gd2"], packed["bed2"],
        packed["wd3"], packed["bd3"],
    ]
    vmem_spec = pl.BlockSpec(memory_space=pltpu.MemorySpace.VMEM)
    out_shape = (
        jax.ShapeDtypeStruct((B, out_pad), jnp.float32),    # padded reconstruction
        jax.ShapeDtypeStruct((B, 2 * Z_DIM), jnp.float32),  # packed [mu | log_var]
    )
    # TODO(synk): for production batch sizes, tile the batch with a grid and
    # VMEM-resident weight BlockSpecs; that requires a two-pass (stats +
    # normalize) BatchNorm, since per-tile batch statistics change the result.
    xr_pad, mulv = pl.pallas_call(
        _vae_kernel,
        out_shape=out_shape,
        in_specs=[vmem_spec] * len(args),
        out_specs=(vmem_spec, vmem_spec),
    )(*args)

    x_recon = xr_pad[:, :output_dim]
    mu = mulv[:, :Z_DIM]
    log_var = mulv[:, Z_DIM:]
    return x_recon, mu, log_var


if __name__ == "__main__":
    INPUT_DIM = 32
    OUTPUT_DIM = 32
    BATCH = 8

    root = jax.random.PRNGKey(0)
    k_params, k_x, k_eps = jax.random.split(root, 3)

    params = init_params(k_params, INPUT_DIM, OUTPUT_DIM)
    packed = pack_params(params, INPUT_DIM, OUTPUT_DIM)   # one-time, outside jit

    x = jax.random.normal(k_x, (BATCH, INPUT_DIM), jnp.float32)
    # eps = torch.randn_like(std) * 0.001
    eps = jax.random.normal(k_eps, (BATCH, Z_DIM), jnp.float32) * 0.001

    x_recon, mu, log_var = vae_forward(x, eps, packed, OUTPUT_DIM)
    jax.block_until_ready((x_recon, mu, log_var))

    assert x_recon.shape == (BATCH, OUTPUT_DIM)
    assert mu.shape == (BATCH, Z_DIM)
    assert log_var.shape == (BATCH, Z_DIM)
    print("KERNEL_OK")
</pallas_src>

<mosaic_0001>
module attributes {stable_mosaic.version = 11 : i64} {
  func.func @_vae_kernel(%arg0: memref<8x128xf32, #tpu.memory_space<vmem>>, %arg1: memref<8x64xf32, #tpu.memory_space<vmem>>, %arg2: memref<128x256xbf16, #tpu.memory_space<vmem>>, %arg3: memref<1x256xf32, #tpu.memory_space<vmem>>, %arg4: memref<1x256xf32, #tpu.memory_space<vmem>>, %arg5: memref<256x128xbf16, #tpu.memory_space<vmem>>, %arg6: memref<1x128xf32, #tpu.memory_space<vmem>>, %arg7: memref<1x128xf32, #tpu.memory_space<vmem>>, %arg8: memref<128x128xbf16, #tpu.memory_space<vmem>>, %arg9: memref<1x128xf32, #tpu.memory_space<vmem>>, %arg10: memref<64x128xbf16, #tpu.memory_space<vmem>>, %arg11: memref<1x128xf32, #tpu.memory_space<vmem>>, %arg12: memref<1x128xf32, #tpu.memory_space<vmem>>, %arg13: memref<128x128xbf16, #tpu.memory_space<vmem>>, %arg14: memref<1x128xf32, #tpu.memory_space<vmem>>, %arg15: memref<1x128xf32, #tpu.memory_space<vmem>>, %arg16: memref<128x128xbf16, #tpu.memory_space<vmem>>, %arg17: memref<1x128xf32, #tpu.memory_space<vmem>>, %arg18: memref<8x128xf32, #tpu.memory_space<vmem>>, %arg19: memref<8x128xf32, #tpu.memory_space<vmem>>) attributes {dimension_semantics = [], scalar_prefetch = 0 : i64, scratch_operands = 0 : i64, tpu.core_type = #tpu.core_type<tc>} {
    %c0 = arith.constant 0 : index
    %c0_0 = arith.constant 0 : index
    %0 = vector.load %arg0[%c0, %c0_0] : memref<8x128xf32, #tpu.memory_space<vmem>>, vector<8x128xf32>
    %1 = arith.truncf %0 : vector<8x128xf32> to vector<8x128xbf16>
    %c0_1 = arith.constant 0 : index
    %c0_2 = arith.constant 0 : index
    %2 = vector.load %arg2[%c0_1, %c0_2] : memref<128x256xbf16, #tpu.memory_space<vmem>>, vector<128x256xbf16>
    %cst = arith.constant dense<0.000000e+00> : vector<8x256xf32>
    %3 = tpu.matmul %1, %2, %cst {dimension_numbers = #tpu.dot_dimension_numbers<[1], [0], [0], [1], [0, 0, 1, 1], [], []>} : vector<8x128xbf16>, vector<128x256xbf16>, vector<8x256xf32> -> vector<8x256xf32>
    %cst_3 = arith.constant dense<0.000000e+00> : vector<256xf32>
    %4 = vector.multi_reduction <add>, %3, %cst_3 [0] : vector<8x256xf32> to vector<256xf32>
    %5 = vector.shape_cast %4 : vector<256xf32> to vector<1x256xf32>
    %6 = arith.mulf %3, %3 : vector<8x256xf32>
    %cst_4 = arith.constant dense<0.000000e+00> : vector<256xf32>
    %7 = vector.multi_reduction <add>, %6, %cst_4 [0] : vector<8x256xf32> to vector<256xf32>
    %8 = vector.shape_cast %7 : vector<256xf32> to vector<1x256xf32>
    %cst_5 = arith.constant 1.250000e-01 : f32
    %9 = vector.broadcast %cst_5 : f32 to vector<1x256xf32>
    %10 = arith.mulf %5, %9 : vector<1x256xf32>
    %cst_6 = arith.constant 1.250000e-01 : f32
    %11 = vector.broadcast %cst_6 : f32 to vector<1x256xf32>
    %12 = arith.mulf %8, %11 : vector<1x256xf32>
    %13 = arith.mulf %10, %10 : vector<1x256xf32>
    %14 = arith.subf %12, %13 : vector<1x256xf32>
    %cst_7 = arith.constant 0.000000e+00 : f32
    %15 = vector.broadcast %cst_7 : f32 to vector<1x256xf32>
    %16 = arith.maximumf %14, %15 : vector<1x256xf32>
    %c0_8 = arith.constant 0 : index
    %c0_9 = arith.constant 0 : index
    %17 = vector.load %arg3[%c0_8, %c0_9] : memref<1x256xf32, #tpu.memory_space<vmem>>, vector<1x256xf32>
    %cst_10 = arith.constant 9.99999974E-6 : f32
    %18 = vector.broadcast %cst_10 : f32 to vector<1x256xf32>
    %19 = arith.addf %16, %18 : vector<1x256xf32>
    %20 = math.rsqrt %19 : vector<1x256xf32>
    %21 = arith.mulf %17, %20 : vector<1x256xf32>
    %22 = vector.broadcast %21 : vector<1x256xf32> to vector<8x256xf32>
    %23 = arith.mulf %3, %22 : vector<8x256xf32>
    %c0_11 = arith.constant 0 : index
    %c0_12 = arith.constant 0 : index
    %24 = vector.load %arg4[%c0_11, %c0_12] : memref<1x256xf32, #tpu.memory_space<vmem>>, vector<1x256xf32>
    %25 = arith.mulf %10, %21 : vector<1x256xf32>
    %26 = arith.subf %24, %25 : vector<1x256xf32>
    %27 = vector.broadcast %26 : vector<1x256xf32> to vector<8x256xf32>
    %28 = arith.addf %23, %27 : vector<8x256xf32>
    %cst_13 = arith.constant 0.000000e+00 : f32
    %29 = vector.broadcast %cst_13 : f32 to vector<8x256xf32>
    %30 = arith.cmpf ogt, %28, %29 : vector<8x256xf32>
    %cst_14 = arith.constant 2.000000e-01 : f32
    %31 = vector.broadcast %cst_14 : f32 to vector<8x256xf32>
    %32 = arith.mulf %31, %28 : vector<8x256xf32>
    %33 = arith.select %30, %28, %32 : vector<8x256xi1>, vector<8x256xf32>
    %34 = arith.truncf %33 : vector<8x256xf32> to vector<8x256xbf16>
    %c0_15 = arith.constant 0 : index
    %c0_16 = arith.constant 0 : index
    %35 = vector.load %arg5[%c0_15, %c0_16] : memref<256x128xbf16, #tpu.memory_space<vmem>>, vector<256x128xbf16>
    %cst_17 = arith.constant dense<0.000000e+00> : vector<8x128xf32>
    %36 = tpu.matmul %34, %35, %cst_17 {dimension_numbers = #tpu.dot_dimension_numbers<[1], [0], [0], [1], [0, 0, 1, 1], [], []>} : vector<8x256xbf16>, vector<256x128xbf16>, vector<8x128xf32> -> vector<8x128xf32>
    %cst_18 = arith.constant dense<0.000000e+00> : vector<128xf32>
    %37 = vector.multi_reduction <add>, %36, %cst_18 [0] : vector<8x128xf32> to vector<128xf32>
    %38 = vector.shape_cast %37 : vector<128xf32> to vector<1x128xf32>
    %39 = arith.mulf %36, %36 : vector<8x128xf32>
    %cst_19 = arith.constant dense<0.000000e+00> : vector<128xf32>
    %40 = vector.multi_reduction <add>, %39, %cst_19 [0] : vector<8x128xf32> to vector<128xf32>
    %41 = vector.shape_cast %40 : vector<128xf32> to vector<1x128xf32>
    %cst_20 = arith.constant 1.250000e-01 : f32
    %42 = vector.broadcast %cst_20 : f32 to vector<1x128xf32>
    %43 = arith.mulf %38, %42 : vector<1x128xf32>
    %cst_21 = arith.constant 1.250000e-01 : f32
    %44 = vector.broadcast %cst_21 : f32 to vector<1x128xf32>
    %45 = arith.mulf %41, %44 : vector<1x128xf32>
    %46 = arith.mulf %43, %43 : vector<1x128xf32>
    %47 = arith.subf %45, %46 : vector<1x128xf32>
    %cst_22 = arith.constant 0.000000e+00 : f32
    %48 = vector.broadcast %cst_22 : f32 to vector<1x128xf32>
    %49 = arith.maximumf %47, %48 : vector<1x128xf32>
    %c0_23 = arith.constant 0 : index
    %c0_24 = arith.constant 0 : index
    %50 = vector.load %arg6[%c0_23, %c0_24] : memref<1x128xf32, #tpu.memory_space<vmem>>, vector<1x128xf32>
    %cst_25 = arith.constant 9.99999974E-6 : f32
    %51 = vector.broadcast %cst_25 : f32 to vector<1x128xf32>
    %52 = arith.addf %49, %51 : vector<1x128xf32>
    %53 = math.rsqrt %52 : vector<1x128xf32>
    %54 = arith.mulf %50, %53 : vector<1x128xf32>
    %55 = vector.broadcast %54 : vector<1x128xf32> to vector<8x128xf32>
    %56 = arith.mulf %36, %55 : vector<8x128xf32>
    %c0_26 = arith.constant 0 : index
    %c0_27 = arith.constant 0 : index
    %57 = vector.load %arg7[%c0_26, %c0_27] : memref<1x128xf32, #tpu.memory_space<vmem>>, vector<1x128xf32>
    %58 = arith.mulf %43, %54 : vector<1x128xf32>
    %59 = arith.subf %57, %58 : vector<1x128xf32>
    %60 = vector.broadcast %59 : vector<1x128xf32> to vector<8x128xf32>
    %61 = arith.addf %56, %60 : vector<8x128xf32>
    %cst_28 = arith.constant 0.000000e+00 : f32
    %62 = vector.broadcast %cst_28 : f32 to vector<8x128xf32>
    %63 = arith.cmpf ogt, %61, %62 : vector<8x128xf32>
    %cst_29 = arith.constant 2.000000e-01 : f32
    %64 = vector.broadcast %cst_29 : f32 to vector<8x128xf32>
    %65 = arith.mulf %64, %61 : vector<8x128xf32>
    %66 = arith.select %63, %61, %65 : vector<8x128xi1>, vector<8x128xf32>
    %67 = arith.truncf %66 : vector<8x128xf32> to vector<8x128xbf16>
    %c0_30 = arith.constant 0 : index
    %c0_31 = arith.constant 0 : index
    %68 = vector.load %arg8[%c0_30, %c0_31] : memref<128x128xbf16, #tpu.memory_space<vmem>>, vector<128x128xbf16>
    %cst_32 = arith.constant dense<0.000000e+00> : vector<8x128xf32>
    %69 = tpu.matmul %67, %68, %cst_32 {dimension_numbers = #tpu.dot_dimension_numbers<[1], [0], [0], [1], [0, 0, 1, 1], [], []>} : vector<8x128xbf16>, vector<128x128xbf16>, vector<8x128xf32> -> vector<8x128xf32>
    %c0_33 = arith.constant 0 : index
    %c0_34 = arith.constant 0 : index
    %70 = vector.load %arg9[%c0_33, %c0_34] : memref<1x128xf32, #tpu.memory_space<vmem>>, vector<1x128xf32>
    %71 = vector.broadcast %70 : vector<1x128xf32> to vector<8x128xf32>
    %72 = arith.addf %69, %71 : vector<8x128xf32>
    %c0_35 = arith.constant 0 : index
    %c0_36 = arith.constant 0 : index
    %73 = vector.load %arg19[%c0_35, %c0_36] : memref<8x128xf32, #tpu.memory_space<vmem>>, vector<8x128xf32>
    tpu.vector_store %arg19[%c0_35, %c0_36], %72 {strides = array<i32>} : memref<8x128xf32, #tpu.memory_space<vmem>>, vector<8x128xf32>,
    %74 = vector.extract_strided_slice %72 {offsets = [0, 0], sizes = [8, 64], strides = [1, 1]} : vector<8x128xf32> to vector<8x64xf32>
    %75 = vector.extract_strided_slice %72 {offsets = [0, 64], sizes = [8, 64], strides = [1, 1]} : vector<8x128xf32> to vector<8x64xf32>
    %c0_37 = arith.constant 0 : index
    %c0_38 = arith.constant 0 : index
    %76 = vector.load %arg1[%c0_37, %c0_38] : memref<8x64xf32, #tpu.memory_space<vmem>>, vector<8x64xf32>
    %cst_39 = arith.constant 5.000000e-01 : f32
    %77 = vector.broadcast %cst_39 : f32 to vector<8x64xf32>
    %78 = arith.mulf %77, %75 : vector<8x64xf32>
    %79 = math.exp %78 : vector<8x64xf32>
    %80 = arith.mulf %76, %79 : vector<8x64xf32>
    %81 = arith.addf %74, %80 : vector<8x64xf32>
    %82 = arith.truncf %81 : vector<8x64xf32> to vector<8x64xbf16>
    %c0_40 = arith.constant 0 : index
    %c0_41 = arith.constant 0 : index
    %83 = vector.load %arg10[%c0_40, %c0_41] : memref<64x128xbf16, #tpu.memory_space<vmem>>, vector<64x128xbf16>
    %cst_42 = arith.constant dense<0.000000e+00> : vector<8x128xf32>
    %84 = tpu.matmul %82, %83, %cst_42 {dimension_numbers = #tpu.dot_dimension_numbers<[1], [0], [0], [1], [0, 0, 1, 1], [], []>} : vector<8x64xbf16>, vector<64x128xbf16>, vector<8x128xf32> -> vector<8x128xf32>
    %cst_43 = arith.constant dense<0.000000e+00> : vector<128xf32>
    %85 = vector.multi_reduction <add>, %84, %cst_43 [0] : vector<8x128xf32> to vector<128xf32>
    %86 = vector.shape_cast %85 : vector<128xf32> to vector<1x128xf32>
    %87 = arith.mulf %84, %84 : vector<8x128xf32>
    %cst_44 = arith.constant dense<0.000000e+00> : vector<128xf32>
    %88 = vector.multi_reduction <add>, %87, %cst_44 [0] : vector<8x128xf32> to vector<128xf32>
    %89 = vector.shape_cast %88 : vector<128xf32> to vector<1x128xf32>
    %cst_45 = arith.constant 1.250000e-01 : f32
    %90 = vector.broadcast %cst_45 : f32 to vector<1x128xf32>
    %91 = arith.mulf %86, %90 : vector<1x128xf32>
    %cst_46 = arith.constant 1.250000e-01 : f32
    %92 = vector.broadcast %cst_46 : f32 to vector<1x128xf32>
    %93 = arith.mulf %89, %92 : vector<1x128xf32>
    %94 = arith.mulf %91, %91 : vector<1x128xf32>
    %95 = arith.subf %93, %94 : vector<1x128xf32>
    %cst_47 = arith.constant 0.000000e+00 : f32
    %96 = vector.broadcast %cst_47 : f32 to vector<1x128xf32>
    %97 = arith.maximumf %95, %96 : vector<1x128xf32>
    %c0_48 = arith.constant 0 : index
    %c0_49 = arith.constant 0 : index
    %98 = vector.load %arg11[%c0_48, %c0_49] : memref<1x128xf32, #tpu.memory_space<vmem>>, vector<1x128xf32>
    %cst_50 = arith.constant 9.99999974E-6 : f32
    %99 = vector.broadcast %cst_50 : f32 to vector<1x128xf32>
    %100 = arith.addf %97, %99 : vector<1x128xf32>
    %101 = math.rsqrt %100 : vector<1x128xf32>
    %102 = arith.mulf %98, %101 : vector<1x128xf32>
    %103 = vector.broadcast %102 : vector<1x128xf32> to vector<8x128xf32>
    %104 = arith.mulf %84, %103 : vector<8x128xf32>
    %c0_51 = arith.constant 0 : index
    %c0_52 = arith.constant 0 : index
    %105 = vector.load %arg12[%c0_51, %c0_52] : memref<1x128xf32, #tpu.memory_space<vmem>>, vector<1x128xf32>
    %106 = arith.mulf %91, %102 : vector<1x128xf32>
    %107 = arith.subf %105, %106 : vector<1x128xf32>
    %108 = vector.broadcast %107 : vector<1x128xf32> to vector<8x128xf32>
    %109 = arith.addf %104, %108 : vector<8x128xf32>
    %cst_53 = arith.constant 0.000000e+00 : f32
    %110 = vector.broadcast %cst_53 : f32 to vector<8x128xf32>
    %111 = arith.cmpf ogt, %109, %110 : vector<8x128xf32>
    %cst_54 = arith.constant 2.000000e-01 : f32
    %112 = vector.broadcast %cst_54 : f32 to vector<8x128xf32>
    %113 = arith.mulf %112, %109 : vector<8x128xf32>
    %114 = arith.select %111, %109, %113 : vector<8x128xi1>, vector<8x128xf32>
    %115 = arith.truncf %114 : vector<8x128xf32> to vector<8x128xbf16>
    %c0_55 = arith.constant 0 : index
    %c0_56 = arith.constant 0 : index
    %116 = vector.load %arg13[%c0_55, %c0_56] : memref<128x128xbf16, #tpu.memory_space<vmem>>, vector<128x128xbf16>
    %cst_57 = arith.constant dense<0.000000e+00> : vector<8x128xf32>
    %117 = tpu.matmul %115, %116, %cst_57 {dimension_numbers = #tpu.dot_dimension_numbers<[1], [0], [0], [1], [0, 0, 1, 1], [], []>} : vector<8x128xbf16>, vector<128x128xbf16>, vector<8x128xf32> -> vector<8x128xf32>
    %cst_58 = arith.constant dense<0.000000e+00> : vector<128xf32>
    %118 = vector.multi_reduction <add>, %117, %cst_58 [0] : vector<8x128xf32> to vector<128xf32>
    %119 = vector.shape_cast %118 : vector<128xf32> to vector<1x128xf32>
    %120 = arith.mulf %117, %117 : vector<8x128xf32>
    %cst_59 = arith.constant dense<0.000000e+00> : vector<128xf32>
    %121 = vector.multi_reduction <add>, %120, %cst_59 [0] : vector<8x128xf32> to vector<128xf32>
    %122 = vector.shape_cast %121 : vector<128xf32> to vector<1x128xf32>
    %cst_60 = arith.constant 1.250000e-01 : f32
    %123 = vector.broadcast %cst_60 : f32 to vector<1x128xf32>
    %124 = arith.mulf %119, %123 : vector<1x128xf32>
    %cst_61 = arith.constant 1.250000e-01 : f32
    %125 = vector.broadcast %cst_61 : f32 to vector<1x128xf32>
    %126 = arith.mulf %122, %125 : vector<1x128xf32>
    %127 = arith.mulf %124, %124 : vector<1x128xf32>
    %128 = arith.subf %126, %127 : vector<1x128xf32>
    %cst_62 = arith.constant 0.000000e+00 : f32
    %129 = vector.broadcast %cst_62 : f32 to vector<1x128xf32>
    %130 = arith.maximumf %128, %129 : vector<1x128xf32>
    %c0_63 = arith.constant 0 : index
    %c0_64 = arith.constant 0 : index
    %131 = vector.load %arg14[%c0_63, %c0_64] : memref<1x128xf32, #tpu.memory_space<vmem>>, vector<1x128xf32>
    %cst_65 = arith.constant 9.99999974E-6 : f32
    %132 = vector.broadcast %cst_65 : f32 to vector<1x128xf32>
    %133 = arith.addf %130, %132 : vector<1x128xf32>
    %134 = math.rsqrt %133 : vector<1x128xf32>
    %135 = arith.mulf %131, %134 : vector<1x128xf32>
    %136 = vector.broadcast %135 : vector<1x128xf32> to vector<8x128xf32>
    %137 = arith.mulf %117, %136 : vector<8x128xf32>
    %c0_66 = arith.constant 0 : index
    %c0_67 = arith.constant 0 : index
    %138 = vector.load %arg15[%c0_66, %c0_67] : memref<1x128xf32, #tpu.memory_space<vmem>>, vector<1x128xf32>
    %139 = arith.mulf %124, %135 : vector<1x128xf32>
    %140 = arith.subf %138, %139 : vector<1x128xf32>
    %141 = vector.broadcast %140 : vector<1x128xf32> to vector<8x128xf32>
    %142 = arith.addf %137, %141 : vector<8x128xf32>
    %cst_68 = arith.constant 0.000000e+00 : f32
    %143 = vector.broadcast %cst_68 : f32 to vector<8x128xf32>
    %144 = arith.cmpf ogt, %142, %143 : vector<8x128xf32>
    %cst_69 = arith.constant 2.000000e-01 : f32
    %145 = vector.broadcast %cst_69 : f32 to vector<8x128xf32>
    %146 = arith.mulf %145, %142 : vector<8x128xf32>
    %147 = arith.select %144, %142, %146 : vector<8x128xi1>, vector<8x128xf32>
    %148 = arith.truncf %147 : vector<8x128xf32> to vector<8x128xbf16>
    %c0_70 = arith.constant 0 : index
    %c0_71 = arith.constant 0 : index
    %149 = vector.load %arg16[%c0_70, %c0_71] : memref<128x128xbf16, #tpu.memory_space<vmem>>, vector<128x128xbf16>
    %cst_72 = arith.constant dense<0.000000e+00> : vector<8x128xf32>
    %150 = tpu.matmul %148, %149, %cst_72 {dimension_numbers = #tpu.dot_dimension_numbers<[1], [0], [0], [1], [0, 0, 1, 1], [], []>} : vector<8x128xbf16>, vector<128x128xbf16>, vector<8x128xf32> -> vector<8x128xf32>
    %c0_73 = arith.constant 0 : index
    %c0_74 = arith.constant 0 : index
    %151 = vector.load %arg17[%c0_73, %c0_74] : memref<1x128xf32, #tpu.memory_space<vmem>>, vector<1x128xf32>
    %152 = vector.broadcast %151 : vector<1x128xf32> to vector<8x128xf32>
    %153 = arith.addf %150, %152 : vector<8x128xf32>
    %c0_75 = arith.constant 0 : index
    %c0_76 = arith.constant 0 : index
    %154 = vector.load %arg18[%c0_75, %c0_76] : memref<8x128xf32, #tpu.memory_space<vmem>>, vector<8x128xf32>
    tpu.vector_store %arg18[%c0_75, %c0_76], %153 {strides = array<i32>} : memref<8x128xf32, #tpu.memory_space<vmem>>, vector<8x128xf32>,
    return
  }
}

</mosaic_0001>

<bundles_post_ra>
// kernel: vae_forward.1
= control target key start
LH: loop header
LB: loop body
LE: loop exit
PB: predicated region body
PF: predicated region fallthrough
CT: control target
= control target key end

     0   :  { %s2103_s0 = inlined_call_operand.vmem [shape: f32[8,128], index: 0, kind: input, shape index: {}]   ;;  %s2104_s1 = inlined_call_operand.vmem [shape: f32[8,64], index: 1, kind: input, shape index: {}]   ;;  %s2105_s2 = inlined_call_operand.hbm [shape: bf16[128,256], index: 2, kind: input, shape index: {}]   ;;  %s2106_s3 = inlined_call_operand.vmem [shape: f32[1,256], index: 3, kind: input, shape index: {}]   ;;  %s2107_s4 = inlined_call_operand.hbm [shape: f32[1,256], index: 4, kind: input, shape index: {}]   ;;  %s2108_s5 = inlined_call_operand.hbm [shape: bf16[256,128], index: 5, kind: input, shape index: {}]   ;;  %s2109_s6 = inlined_call_operand.hbm [shape: f32[1,128], index: 6, kind: input, shape index: {}]   ;;  %s2110_s7 = inlined_call_operand.hbm [shape: f32[1,128], index: 7, kind: input, shape index: {}]   ;;  %s2111_s8 = inlined_call_operand.hbm [shape: bf16[128,128], index: 8, kind: input, shape index: {}]   ;;  %s2112_s9 = inlined_call_operand.hbm [shape: f32[1,128], index: 9, kind: input, shape index: {}]   ;;  %s2113_s10 = inlined_call_operand.vmem [shape: bf16[64,128], index: 10, kind: input, shape index: {}]   ;;  %s2114_s11 = inlined_call_operand.hbm [shape: f32[1,128], index: 11, kind: input, shape index: {}]   ;;  %s2115_s12 = inlined_call_operand.hbm [shape: f32[1,128], index: 12, kind: input, shape index: {}]   ;;  %s2116_s13 = inlined_call_operand.hbm [shape: bf16[128,128], index: 13, kind: input, shape index: {}]   ;;  %s2117_s14 = inlined_call_operand.hbm [shape: f32[1,128], index: 14, kind: input, shape index: {}]   ;;  %s2118_s15 = inlined_call_operand.hbm [shape: f32[1,128], index: 15, kind: input, shape index: {}]   ;;  %s2119_s16 = inlined_call_operand.hbm [shape: bf16[128,128], index: 16, kind: input, shape index: {}]   ;;  %s2120_s17 = inlined_call_operand.hbm [shape: f32[1,128], index: 17, kind: input, shape index: {}]   ;;  %s2121_s18 = inlined_call_operand.hbm [shape: f32[8,128], index: 18, kind: output, shape index: {0}]   ;;  %s2122_s19 = inlined_call_operand.vmem [shape: f32[8,128], index: 19, kind: output, shape index: {1}]  }
   0x1   :  { %2123 = sst [smem:[#allocation35_spill]] %s2103_s0 }
   0x2   :  { %2124 = sst [smem:[#allocation36_spill]] %s2104_s1 }
   0x3   :  { %2125 = sst [smem:[#allocation37_spill]] %s2105_s2 }
   0x4   :  { %2126 = sst [smem:[#allocation38_spill]] %s2106_s3 }
   0x5   :  { %25 = vsyncpa [#allocation3], 0 }
   0x6   :  { %26 = vsyncpa [#allocation6], 0 }
   0x7   :  { %27 = vsyncpa [#allocation9], 0 }
   0x8   :  { %28 = vsyncpa [#allocation12], 0 }
   0x9   :  { %29 = vsyncpa [#allocation15], 0 }
   0xa   :  { %30 = vsyncpa [#allocation18], 0 }
   0xb   :  { %31 = vsyncpa [#allocation21], 0 }
   0xc   :  { %32 = vsyncpa [#allocation24], 0 }
   0xd   :  { %33 = vsyncpa [#allocation4], 0  ;;  %s1838_s0 = smov [#allocation5]   ;;  %s1839_s20 = smov [#allocation8]  }
   0xe   :  { %s58_s30 = sshll.u32 %s1838_s0, 4  ;;  %s80_s21 = sshll.u32 %s1839_s20, 4  ;;  %s59_s30 = int_to_ptr.vmem [resolvable:$true] %s58_s30  ;;  %s81_s21 = int_to_ptr.vmem [resolvable:$true] %s80_s21 }
   0xf   :  { %s1528_s1 = scalar_lea.vmem %s59_s30, 32  ;;  %p1533_p1 = scmp.lt.s32.totalorder %s59_s30, %s59_s30 }
  0x10   :  { %p1529_p0 = scmp.ne.s32.totalorder %s59_s30, %s1528_s1  ;;  %p1534_p2 = scmp.lt.s32.totalorder %s1528_s1, %s1528_s1 }
  0x12   :  { %p1535_p3 = por %p1534_p2, %p1533_p1 }
  0x14   :  { %p1536_p4 = pnand %p1535_p3, %p1529_p0 }
  0x16   :  { %1539 = shalt.err (!%p1536_p4)
}
  0x17   :  { %61 = dma.hbm_to_vmem [thread:$0]  %s2107_s4, 32, %s59_s30, [#allocation6]  }
  0x18   :  { %s1548_s23 = scalar_lea.vmem %s81_s21, 16  ;;  %s1552_s24 = scalar_lea.vmem %s81_s21, 32 }
  0x19   :  { %p1549_p5 = scmp.ne.s32.totalorder %s81_s21, %s1548_s23  ;;  %p1553_p6 = scmp.lt.s32.totalorder %s81_s21, %s81_s21 }
  0x1a   :  { %p1554_p7 = scmp.lt.s32.totalorder %s1552_s24, %s1548_s23 }
  0x1c   :  { %p1555_p8 = por %p1554_p7, %p1553_p6 }
  0x1e   :  { %p1556_p9 = pnand %p1555_p8, %p1549_p5 }
  0x20   :  { %1559 = shalt.err (!%p1556_p9)
}
  0x21   :  { %83 = dma.hbm_to_vmem [thread:$0]  %s2109_s6, 16, %s81_s21, [#allocation9]  }
  0x22   :  { %s1840_s26 = smov [#allocation11]   ;;  %s1841_s28 = smov [#allocation14]  }
  0x23   :  { %s99_s27 = sshll.u32 %s1840_s26, 4  ;;  %s124_s29 = sshll.u32 %s1841_s28, 4  ;;  %s100_s27 = int_to_ptr.vmem [resolvable:$true] %s99_s27  ;;  %s125_s29 = int_to_ptr.vmem [resolvable:$true] %s124_s29 }
  0x24   :  { %s1568_s0 = scalar_lea.vmem %s100_s27, 1024  ;;  %p1573_p11 = scmp.lt.s32.totalorder %s100_s27, %s100_s27 }
  0x25   :  { %p1569_p10 = scmp.ne.s32.totalorder %s100_s27, %s1568_s0  ;;  %p1574_p12 = scmp.lt.s32.totalorder %s1568_s0, %s1568_s0 }
  0x27   :  { %p1575_p13 = por %p1574_p12, %p1573_p11 }
  0x29   :  { %p1576_p0 = pnand %p1575_p13, %p1569_p10 }
  0x2b   :  { %1579 = shalt.err (!%p1576_p0)
}
  0x2c   :  { %s1842_s4 = smov 64   ;;  %s1843_s30 = smov 4  }
  0x2d   :  { %105 = dma.hbm_to_vmem [thread:$0]  %s2111_s8, 1024, %s100_s27, [#allocation12], %s1842_s4, %s1842_s4, %s1843_s30  }
  0x2e   :  { %s1588_s21 = scalar_lea.vmem %s125_s29, 16  ;;  %s1592_s1 = scalar_lea.vmem %s125_s29, 32 }
  0x2f   :  { %p1589_p1 = scmp.ne.s32.totalorder %s125_s29, %s1588_s21  ;;  %p1593_p2 = scmp.lt.s32.totalorder %s125_s29, %s125_s29 }
  0x30   :  { %p1594_p3 = scmp.lt.s32.totalorder %s1592_s1, %s1588_s21 }
  0x32   :  { %p1595_p4 = por %p1594_p3, %p1593_p2 }
  0x34   :  { %p1596_p5 = pnand %p1595_p4, %p1589_p1 }
  0x36   :  { %1599 = shalt.err (!%p1596_p5)
}
  0x37   :  { %127 = dma.hbm_to_vmem [thread:$0]  %s2114_s11, 16, %s125_s29, [#allocation15]  }
  0x38   :  { %s1844_s23 = smov [#allocation17]   ;;  %s1845_s25 = smov [#allocation20]  }
  0x39   :  { %s143_s24 = sshll.u32 %s1844_s23, 4  ;;  %s166_s3 = sshll.u32 %s1845_s25, 4  ;;  %s144_s24 = int_to_ptr.vmem [resolvable:$true] %s143_s24  ;;  %s167_s3 = int_to_ptr.vmem [resolvable:$true] %s166_s3 }
  0x3a   :  { %s1608_s26 = scalar_lea.vmem %s144_s24, 1024  ;;  %p1613_p7 = scmp.lt.s32.totalorder %s144_s24, %s144_s24 }
  0x3b   :  { %p1609_p6 = scmp.ne.s32.totalorder %s144_s24, %s1608_s26  ;;  %p1614_p8 = scmp.lt.s32.totalorder %s1608_s26, %s1608_s26 }
  0x3d   :  { %p1615_p9 = por %p1614_p8, %p1613_p7 }
  0x3f   :  { %p1616_p10 = pnand %p1615_p9, %p1609_p6 }
  0x41   :  { %1619 = shalt.err (!%p1616_p10)
}
  0x42   :  { %149 = dma.hbm_to_vmem [thread:$0]  %s2116_s13, 1024, %s144_s24, [#allocation18], %s1842_s4, %s1842_s4, %s1843_s30  }
  0x43   :  { %s1628_s11 = scalar_lea.vmem %s167_s3, 16  ;;  %s1632_s28 = scalar_lea.vmem %s167_s3, 32 }
  0x44   :  { %p1629_p11 = scmp.ne.s32.totalorder %s167_s3, %s1628_s11  ;;  %p1633_p12 = scmp.lt.s32.totalorder %s167_s3, %s167_s3 }
  0x45   :  { %p1634_p13 = scmp.lt.s32.totalorder %s1632_s28, %s1628_s11 }
  0x47   :  { %p1635_p0 = por %p1634_p13, %p1633_p12 }
  0x49   :  { %p1636_p1 = pnand %p1635_p0, %p1629_p11 }
  0x4b   :  { %1639 = shalt.err (!%p1636_p1)
}
  0x4c   :  { %169 = dma.hbm_to_vmem [thread:$0]  %s2118_s15, 16, %s167_s3, [#allocation21]  }
  0x4d   :  { %s1846_s20 = smov [#allocation2]  }
  0x4e   :  { %s43_s6 = sshll.u32 %s1846_s20, 4  ;;  %s44_s6 = int_to_ptr.vmem [resolvable:$true] %s43_s6 }
  0x4f   :  { %s1648_s21 = scalar_lea.vmem %s44_s6, 2048  ;;  %p1653_p3 = scmp.lt.s32.totalorder %s44_s6, %s44_s6 }
  0x50   :  { %p1649_p2 = scmp.ne.s32.totalorder %s44_s6, %s1648_s21  ;;  %p1654_p4 = scmp.lt.s32.totalorder %s1648_s21, %s1648_s21 }
  0x52   :  { %p1655_p5 = por %p1654_p4, %p1653_p3 }
  0x54   :  { %p1656_p6 = pnand %p1655_p5, %p1649_p2 }
  0x56   :  { %1659 = shalt.err (!%p1656_p6)
}
  0x57   :  { %s1847_s13 = smov 128   ;;  %s1848_s1 = smov 8  }
  0x58   :  { %s2127_s23 = sld [smem:[#allocation37_spill]]  ;;  %s1849_s24 = smov [#allocation7]  }
  0x59   :  { %s67_s25 = sshll.u32 %s1849_s24, 4  ;;  %s1850_s15 = smov [#allocation10]   ;;  %s68_s25 = int_to_ptr.vmem [resolvable:$true] %s67_s25 }
  0x5a   :  { %s90_s3 = sshll.u32 %s1850_s15, 4  ;;  %s1668_s26 = scalar_lea.vmem %s68_s25, 2048  ;;  %s91_s3 = int_to_ptr.vmem [resolvable:$true] %s90_s3 }
  0x5b   :  { %p1669_p7 = scmp.ne.s32.totalorder %s68_s25, %s1668_s26  ;;  %p1673_p8 = scmp.lt.s32.totalorder %s68_s25, %s68_s25 }
  0x5c   :  { %p1674_p9 = scmp.lt.s32.totalorder %s1668_s26, %s1668_s26 }
  0x5e   :  { %49 = dma.hbm_to_vmem [thread:$0]  %s2127_s23, 2048, %s44_s6, [#allocation3], %s1847_s13, %s1847_s13, %s1848_s1  }
  0x5f   :  { %p1675_p10 = por %p1674_p9, %p1673_p8 }
  0x61   :  { %p1676_p11 = pnand %p1675_p10, %p1669_p7 }
  0x63   :  { %1679 = shalt.err (!%p1676_p11)
}
  0x64   :  { %73 = dma.hbm_to_vmem [thread:$0]  %s2108_s5, 2048, %s68_s25, [#allocation6], %s1842_s4, %s1842_s4, %s1843_s30  }
  0x65   :  { %s1688_s11 = scalar_lea.vmem %s91_s3, 16  ;;  %s1692_s28 = scalar_lea.vmem %s91_s3, 32 }
  0x66   :  { %p1689_p12 = scmp.ne.s32.totalorder %s91_s3, %s1688_s11  ;;  %p1693_p13 = scmp.lt.s32.totalorder %s91_s3, %s91_s3 }
  0x67   :  { %p1694_p0 = scmp.lt.s32.totalorder %s1692_s28, %s1688_s11 }
  0x69   :  { %p1695_p1 = por %p1694_p0, %p1693_p13 }
  0x6b   :  { %p1696_p2 = pnand %p1695_p1, %p1689_p12 }
  0x6d   :  { %1699 = shalt.err (!%p1696_p2)
}
  0x6e   :  { %93 = dma.hbm_to_vmem [thread:$0]  %s2110_s7, 16, %s91_s3, [#allocation9]  }
  0x6f   :  { %s1851_s20 = smov [#allocation13]   ;;  %s1852_s21 = smov [#allocation16]  }
  0x70   :  { %s112_s6 = sshll.u32 %s1851_s20, 4  ;;  %s134_s13 = sshll.u32 %s1852_s21, 4  ;;  %s113_s6 = int_to_ptr.vmem [resolvable:$true] %s112_s6  ;;  %s135_s13 = int_to_ptr.vmem [resolvable:$true] %s134_s13 }
  0x71   :  { %s1708_s1 = scalar_lea.vmem %s113_s6, 16  ;;  %s1712_s5 = scalar_lea.vmem %s113_s6, 32 }
  0x72   :  { %p1709_p3 = scmp.ne.s32.totalorder %s113_s6, %s1708_s1  ;;  %p1713_p4 = scmp.lt.s32.totalorder %s113_s6, %s113_s6 }
  0x73   :  { %p1714_p5 = scmp.lt.s32.totalorder %s1712_s5, %s1708_s1 }
  0x75   :  { %p1715_p6 = por %p1714_p5, %p1713_p4 }
  0x77   :  { %p1716_p7 = pnand %p1715_p6, %p1709_p3 }
  0x79   :  { %1719 = shalt.err (!%p1716_p7)
}
  0x7a   :  { %115 = dma.hbm_to_vmem [thread:$0]  %s2112_s9, 16, %s113_s6, [#allocation12]  }
  0x7b   :  { %s1728_s23 = scalar_lea.vmem %s135_s13, 16  ;;  %s1732_s7 = scalar_lea.vmem %s135_s13, 32 }
  0x7c   :  { %p1729_p8 = scmp.ne.s32.totalorder %s135_s13, %s1728_s23  ;;  %p1733_p9 = scmp.lt.s32.totalorder %s135_s13, %s135_s13 }
  0x7d   :  { %p1734_p10 = scmp.lt.s32.totalorder %s1732_s7, %s1728_s23 }
  0x7f   :  { %p1735_p11 = por %p1734_p10, %p1733_p9 }
  0x81   :  { %p1736_p12 = pnand %p1735_p11, %p1729_p8 }
  0x83   :  { %1739 = shalt.err (!%p1736_p12)
}
  0x84   :  { %137 = dma.hbm_to_vmem [thread:$0]  %s2115_s12, 16, %s135_s13, [#allocation15]  }
  0x85   :  { %s1853_s15 = smov [#allocation19]   ;;  %s1854_s26 = smov [#allocation22]  }
  0x86   :  { %s156_s3 = sshll.u32 %s1853_s15, 4  ;;  %s175_s8 = sshll.u32 %s1854_s26, 4  ;;  %s157_s3 = int_to_ptr.vmem [resolvable:$true] %s156_s3  ;;  %s176_s8 = int_to_ptr.vmem [resolvable:$true] %s175_s8 }
  0x87   :  { %s1748_s27 = scalar_lea.vmem %s157_s3, 16  ;;  %s1752_s9 = scalar_lea.vmem %s157_s3, 32 }
  0x88   :  { %p1749_p13 = scmp.ne.s32.totalorder %s157_s3, %s1748_s27  ;;  %p1753_p0 = scmp.lt.s32.totalorder %s157_s3, %s157_s3 }
  0x89   :  { %p1754_p1 = scmp.lt.s32.totalorder %s1752_s9, %s1748_s27 }
  0x8b   :  { %p1755_p2 = por %p1754_p1, %p1753_p0 }
  0x8d   :  { %p1756_p3 = pnand %p1755_p2, %p1749_p13 }
  0x8f   :  { %1759 = shalt.err (!%p1756_p3)
}
  0x90   :  { %159 = dma.hbm_to_vmem [thread:$0]  %s2117_s14, 16, %s157_s3, [#allocation18]  }
  0x91   :  { %s1768_s29 = scalar_lea.vmem %s176_s8, 1024  ;;  %p1773_p5 = scmp.lt.s32.totalorder %s176_s8, %s176_s8 }
  0x92   :  { %p1769_p4 = scmp.ne.s32.totalorder %s176_s8, %s1768_s29  ;;  %p1774_p6 = scmp.lt.s32.totalorder %s1768_s29, %s1768_s29 }
  0x94   :  { %p1775_p7 = por %p1774_p6, %p1773_p5 }
  0x96   :  { %p1776_p8 = pnand %p1775_p7, %p1769_p4 }
  0x98   :  { %1779 = shalt.err (!%p1776_p8)
}
  0x99   :  { %181 = dma.hbm_to_vmem [thread:$0]  %s2119_s16, 1024, %s176_s8, [#allocation21], %s1842_s4, %s1842_s4, %s1843_s30  }
  0x9a   :  { %s1855_s20 = smov [#allocation23]  }
  0x9b   :  { %s188_s6 = sshll.u32 %s1855_s20, 4  ;;  %s189_s6 = int_to_ptr.vmem [resolvable:$true] %s188_s6 }
  0x9c   :  { %s1788_s21 = scalar_lea.vmem %s189_s6, 16  ;;  %s1792_s14 = scalar_lea.vmem %s189_s6, 32 }
  0x9d   :  { %p1789_p9 = scmp.ne.s32.totalorder %s189_s6, %s1788_s21  ;;  %p1793_p10 = scmp.lt.s32.totalorder %s189_s6, %s189_s6 }
  0x9e   :  { %p1794_p11 = scmp.lt.s32.totalorder %s1792_s14, %s1788_s21 }
  0xa0   :  { %p1795_p12 = por %p1794_p11, %p1793_p10 }
  0xa2   :  { %p1796_p13 = pnand %p1795_p12, %p1789_p9 }
  0xa4   :  { %1799 = shalt.err (!%p1796_p13)
}
  0xa5   :  { %191 = dma.hbm_to_vmem [thread:$0]  %s2120_s17, 16, %s189_s6, [#allocation24]  }
  0xa6   :  { %1820 = dma.done.wait [#allocation3], 2048  }
  0xa7   :  { %1821 = vsyncadd [#allocation3], 4294965248 }
  0xa8   :  { %1822 = dma.done.wait [#allocation6], 2080  }
  0xa9   :  { %1823 = vsyncadd [#allocation6], 4294965216 }
  0xaa   :  { %1824 = dma.done.wait [#allocation9], 32  }
  0xab   :  { %1825 = vsyncadd [#allocation9], 4294967264 }
  0xac   :  { %1826 = dma.done.wait [#allocation12], 1040  }
  0xad   :  { %1827 = vsyncadd [#allocation12], 4294966256 }
  0xae   :  { %1828 = dma.done.wait [#allocation15], 32  }
  0xaf   :  { %1829 = vsyncadd [#allocation15], 4294967264 }
  0xb0   :  { %1830 = dma.done.wait [#allocation18], 1040  }
  0xb1   :  { %1831 = vsyncadd [#allocation18], 4294966256 }
  0xb2   :  { %1832 = dma.done.wait [#allocation21], 1040  }
  0xb3   :  { %1833 = vsyncadd [#allocation21], 4294966256 }
  0xb4   :  { %1834 = dma.done.wait [#allocation24], 16  }
  0xb5   :  { %1835 = vsyncadd [#allocation24], 4294967280  ;;  %v1856_v0 = vmov 0   ;;  %v1440_v1 = vld [vmem:[#allocation2 + $0x74] ss:$8 sps:$4 sm:$0xff]   ;;  %s2128_s30 = sld [smem:[#allocation35_spill]] }
  0xb6   :  { %365 = vmatprep.mubr.bf16.mxu0 %v1856_v0  ;;  %v1442_v2 = vld [vmem:[#allocation2 + $0x70] ss:$8 sps:$4 sm:$0xff]   ;;  %333 = vmatprep.subr.bf16.mxu0 %v1440_v1  ;;  %v1443_v3 = vld [vmem:[#allocation2 + $0x64] ss:$8 sps:$4 sm:$0xff]   ;;  %v1445_v4 = vld [vmem:[#allocation2 + $0x60] ss:$8 sps:$4 sm:$0xff]  }
  0xb7   :  { %334 = vmatpush1.bf16.msra.mxu0 %v1442_v2  ;;  %v1446_v5 = vld [vmem:[#allocation2 + $0x54] ss:$8 sps:$4 sm:$0xff]   ;;  %v1448_v6 = vld [vmem:[#allocation2 + $0x50] ss:$8 sps:$4 sm:$0xff]   ;;  %v1449_v7 = vld [vmem:[#allocation2 + $0x44] ss:$8 sps:$4 sm:$0xff]  }
  0xb8   :  { %335 = vmatprep.subr.bf16.mxu0 %v1443_v3  ;;  %v1451_v8 = vld [vmem:[#allocation2 + $0x40] ss:$8 sps:$4 sm:$0xff]   ;;  %v1452_v9 = vld [vmem:[#allocation2 + $0x34] ss:$8 sps:$4 sm:$0xff]   ;;  %v1454_v10 = vld [vmem:[#allocation2 + $0x30] ss:$8 sps:$4 sm:$0xff]  }
  0xb9   :  { %v1455_v11 = vld [vmem:[#allocation2 + $0x24] ss:$8 sps:$4 sm:$0xff]   ;;  %v1457_v12 = vld [vmem:[#allocation2 + $0x20] ss:$8 sps:$4 sm:$0xff]   ;;  %v1458_v13 = vld [vmem:[#allocation2 + $0x14] ss:$8 sps:$4 sm:$0xff]  }
  0xba   :  { %v1460_v14 = vld [vmem:[#allocation2 + $0x10] ss:$8 sps:$4 sm:$0xff]   ;;  %v1461_v15 = vld [vmem:[#allocation2 + $0x4] ss:$8 sps:$4 sm:$0xff]   ;;  %v1463_v16 = vld [vmem:[#allocation2] ss:$8 sps:$4 sm:$0xff]  }
  0xbb   :  { %336 = vmatpush1.bf16.msra.mxu0 %v1445_v4  ;;  %v235_v17 = vld [vmem:[%s2128_s30] sm:$0xff]  ;;  %v1466_v21 = vld [vmem:[#allocation7 + $0x70] sm:$0xff]   ;;  %v1468_v23 = vld [vmem:[#allocation7 + $0x68] sm:$0xff]   ;;  %s2129_s2 = sld [smem:[#allocation38_spill]]  ;;  %vm1859_vm2 = vmmov 0   ;;  %vm856_vm4 = vcmask 523264  }
  0xbc   :  { %337 = vmatprep.subr.bf16.mxu0 %v1446_v5  ;;  %v236_v18 = vpack.c.bf16 %v235_v17, %v235_v17  ;;  %v1464_v19 = vld [vmem:[#allocation7 + $0x78] sm:$0xff]   ;;  %v1467_v22 = vld [vmem:[#allocation7 + $0x30] sm:$0xff]   ;;  %v1469_v24 = vld [vmem:[#allocation7 + $0x28] sm:$0xff]   ;;  %s2130_s28 = sld [smem:[#allocation36_spill]] }
  0xbd   :  { %v1465_v20 = vld [vmem:[#allocation7 + $0x38] sm:$0xff]   ;;  %1291 = vmatprep.subr.bf16.mxu1 %v1464_v19  ;;  %v1470_v25 = vld [vmem:[#allocation7 + $0x60] sm:$0xff]   ;;  %v1474_v29 = vld [vmem:[#allocation7 + $0x50] sm:$0xff]  }
  0xbe   :  { %1292 = vmatpush3.bf16.msra.mxu1 %v1465_v20  ;;  %v1471_v26 = vld [vmem:[#allocation7 + $0x20] sm:$0xff]   ;;  %v1472_v27 = vld [vmem:[#allocation7 + $0x58] sm:$0xff]   ;;  %v1475_v30 = vld [vmem:[#allocation7 + $0x10] sm:$0xff]  }
  0xbf   :  { %338 = vmatpush1.bf16.msra.mxu0 %v1448_v6  ;;  %1293 = vmatprep.subr.bf16.mxu1 %v1466_v21  ;;  %v1473_v28 = vld [vmem:[#allocation7 + $0x18] sm:$0xff]   ;;  %v1476_v31 = vld [vmem:[#allocation7 + $0x48] sm:$0xff]   ;;  %v1478_v33 = vld [vmem:[#allocation7 + $0x40] sm:$0xff]  }
  0xc0   :  { %339 = vmatprep.subr.bf16.mxu0 %v1449_v7  ;;  %v1477_v32 = vld [vmem:[#allocation7 + $0x8] sm:$0xff]   ;;  %v1479_v34 = vld [vmem:[#allocation7] sm:$0xff]  }
  0xc2   :  { %1294 = vmatpush3.bf16.msra.mxu1 %v1467_v22 }
  0xc3   :  { %340 = vmatpush1.bf16.msra.mxu0 %v1451_v8  ;;  %1295 = vmatprep.subr.bf16.mxu1 %v1468_v23  ;;  %v410_v23 = vld [vmem:[%s2129_s2] sm:$0x3] }
  0xc4   :  { %341 = vmatprep.subr.bf16.mxu0 %v1452_v9 }
  0xc6   :  { %1296 = vmatpush3.bf16.msra.mxu1 %v1469_v24 }
  0xc7   :  { %342 = vmatpush1.bf16.msra.mxu0 %v1454_v10  ;;  %1297 = vmatprep.subr.bf16.mxu1 %v1470_v25 }
  0xc8   :  { %343 = vmatprep.subr.bf16.mxu0 %v1455_v11 }
  0xca   :  { %1298 = vmatpush3.bf16.msra.mxu1 %v1471_v26 }
  0xcb   :  { %344 = vmatpush1.bf16.msra.mxu0 %v1457_v12  ;;  %1299 = vmatprep.subr.bf16.mxu1 %v1472_v27 }
  0xcc   :  { %345 = vmatprep.subr.bf16.mxu0 %v1458_v13  ;;  %v1857_v13 = vmov 1966171168  }
  0xce   :  { %1300 = vmatpush3.bf16.msra.mxu1 %v1473_v28 }
  0xcf   :  { %346 = vmatpush1.bf16.msra.mxu0 %v1460_v14  ;;  %1301 = vmatprep.subr.bf16.mxu1 %v1474_v29  ;;  %v419_v14 = vunpack.c.l.s4 %v1857_v13 }
  0xd0   :  { %347 = vmatprep.subr.bf16.mxu0 %v1461_v15  ;;  %v421_v15 = vlaneseq }
  0xd2   :  { %1302 = vmatpush3.bf16.msra.mxu1 %v1475_v30  ;;  %v422_v17 = vshrl.u32 %v421_v15, 7 }
  0xd3   :  { %348 = vmatpush1.bf16.msra.mxu0 %v1463_v16  ;;  %1303 = vmatprep.subr.bf16.mxu1 %v1476_v31  ;;  %v420_v16 = vunpack.c.0.s8 %v419_v14 }
  0xd4   :  { %v2033_v25 = vsub.s32 0, %v422_v17  ;;  %v441_v26 = vsub.s32 1, %v422_v17 }
  0xd5   :  { %v423_v19 = vsub.s32 %v420_v16, %v422_v17 }
  0xd6   :  { %366 = vmatmul.mubr.bf16.vlgmr.msra.gmra.mxu0 %v236_v18  ;;  %1304 = vmatpush3.bf16.msra.mxu1 %v1477_v32 }
  0xd7   :  { %1305 = vmatprep.subr.bf16.mxu1 %v1478_v33 }
  0xda   :  { %1306 = vmatpush3.bf16.msra.mxu1 %v1479_v34  ;;  %v447_v34 = vld [vmem:[#allocation5] sm:$0x3] }
 0x196   :  { %v2018_v35 = vpop.f32.mrf.mxu0 }
 0x197   :  { %v374_v36 = vrot.slane %v2018_v35, 4  ;;  %v386_v37 = vmul.f32 %v2018_v35, %v2018_v35 }
 0x198   :  { %v2023_v38 = vpop.f32.mrf.mxu0 }
 0x199   :  { %v375_v39 = vadd.f32 %v374_v36, %v2018_v35  ;;  %v388_v40 = vrot.slane %v386_v37, 4  ;;  %v380_v41 = vrot.slane %v2023_v38, 4  ;;  %v387_v42 = vmul.f32 %v2023_v38, %v2023_v38 }
 0x19a   :  { %v371_v43 = vpop.f32.mrf.mxu0 }
 0x19b   :  { %v376_v44 = vrot.slane %v375_v39, 2  ;;  %v389_v45 = vadd.f32 %v388_v40, %v386_v37  ;;  %v381_v46 = vadd.f32 %v380_v41, %v2023_v38  ;;  %v394_v47 = vrot.slane %v387_v42, 4 }
 0x19c   :  { %v372_v48 = vpop.f32.mrf.mxu0 }
 0x19d   :  { %v377_v49 = vadd.f32 %v376_v44, %v375_v39  ;;  %v390_v50 = vrot.slane %v389_v45, 2  ;;  %v382_v51 = vrot.slane %v381_v46, 2  ;;  %v395_v52 = vadd.f32 %v394_v47, %v387_v42 }
 0x19f   :  { %v378_v53 = vrot.slane %v377_v49, 1  ;;  %v391_v54 = vadd.f32 %v390_v50, %v389_v45  ;;  %v383_v55 = vadd.f32 %v382_v51, %v381_v46  ;;  %v396_v56 = vrot.slane %v395_v52, 2  ;;  %v1480_v51 = vld [vmem:[#allocation11 + $0x38] sm:$0xff]  }
 0x1a1   :  { %v379_v57 = vadd.f32 %v378_v53, %v377_v49  ;;  %v392_v58 = vrot.slane %v391_v54, 1  ;;  %v384_v59 = vrot.slane %v383_v55, 1  ;;  %v397_v60 = vadd.f32 %v396_v56, %v395_v52  ;;  %v1483_v53 = vld [vmem:[#allocation11 + $0x20] sm:$0xff]   ;;  %v1486_v56 = vld [vmem:[#allocation11 + $0x8] sm:$0xff]  }
 0x1a2   :  { %v1858_v52 = vmov 0.0  }
 0x1a3   :  { %v393_v61 = vadd.f32 %v392_v58, %v391_v54  ;;  %v400_v62 = vmul.f32 0.125, %v379_v57  ;;  %v385_v63 = vadd.f32 %v384_v59, %v383_v55  ;;  %v398_v0 = vrot.slane %v397_v60, 1  ;;  %1345 = vmatprep.subr.bf16.mxu0 %v1858_v52  ;;  %1365 = vmatprep.subr.bf16.mxu1 %v1858_v52  ;;  %v1484_v54 = vld [vmem:[#allocation11 + $0x18] sm:$0xff]   ;;  %v1485_v55 = vld [vmem:[#allocation11 + $0x10] sm:$0xff]   ;;  %v1487_v57 = vld [vmem:[#allocation11] sm:$0xff]  }
 0x1a4   :  { %1346 = vmatpush3.bf16.msra.mxu0 %v1480_v51  ;;  %1361 = vmatprep.mubr.msk.bf16.mxu0 %vm1859_vm2, %v1858_v52 }
 0x1a5   :  { %v402_v1 = vmul.f32 0.125, %v393_v61  ;;  %v404_v2 = vmul.f32 %v400_v62, %v400_v62  ;;  %v399_v3 = vadd.f32 %v398_v0, %v397_v60  ;;  %v401_v4 = vmul.f32 0.125, %v385_v63  ;;  %1347 = vmatprep.subr.bf16.mxu0 %v1858_v52 }
 0x1a7   :  { %v406_v5 = vsub.f32 %v402_v1, %v404_v2  ;;  %v403_v6 = vmul.f32 0.125, %v399_v3  ;;  %v405_v7 = vmul.f32 %v401_v4, %v401_v4 }
 0x1a9   :  { %v408_v8 = vmax.f32 %v406_v5, 0.0  ;;  %v407_v9 = vsub.f32 %v403_v6, %v405_v7 }
 0x1ab   :  { %v411_v10 = vadd.f32 1e-05, %v408_v8  ;;  %v409_v11 = vmax.f32 %v407_v9, 0.0 }
 0x1ad   :  { %v412_v12 = vadd.f32 1e-05, %v409_v11  ;;  %1508 = vrsqrt.f32 %v411_v10 }
 0x1af   :  { %1510 = vrsqrt.f32 %v412_v12 }
 0x1ba   :  { %v1509_v18 = vpop.eup %1508 }
 0x1bc   :  { %v1511_v20 = vpop.eup %1510 }
 0x1bd   :  { %v417_v21 = vcombine.low %v1509_v18, %v1511_v20  ;;  %v676_v18 = vld [vmem:[#allocation8] sm:$0x1] }
 0x1bf   :  { %v424_v22 = vrot.slane %v417_v21, %v423_v19  ;;  %v687_v21 = vld [vmem:[#allocation10] sm:$0x1] }
 0x1c1   :  { %v431_v24 = vrot.slane %v424_v22, %v423_v19 }
 0x1c3   :  { %v433_v27 = vmul.f32 %v431_v24, %v410_v23 }
 0x1c5   :  { %v438_v28 = vrot.slane %v433_v27, %v2033_v25  ;;  %v442_v29 = vrot.slane %v433_v27, %v441_v26 }
 0x1c7   :  { %v448_v30 = vmul.f32 %v438_v28, %v400_v62  ;;  %v449_v31 = vmul.f32 %v442_v29, %v401_v4  ;;  %v446_v39 = vmul.f32 %v442_v29, %v2023_v38  ;;  %v445_v41 = vmul.f32 %v438_v28, %v2018_v35  ;;  %v1481_v35 = vld [vmem:[#allocation11 + $0x30] sm:$0xff]   ;;  %v1482_v38 = vld [vmem:[#allocation11 + $0x28] sm:$0xff]  }
 0x1c8   :  { %1348 = vmatpush3.bf16.msra.mxu0 %v1481_v35  ;;  %v1492_v35 = vld [vmem:[#allocation17 + $0x38] sm:$0xff]  }
 0x1c9   :  { %v452_v32 = vcombine.low %v448_v30, %v449_v31  ;;  %1349 = vmatprep.subr.bf16.mxu0 %v1858_v52 }
 0x1cb   :  { %v459_v33 = vrot.slane %v452_v32, %v423_v19  ;;  %v1488_v32 = vld [vmem:[%s2113_s10 + $0x18] sm:$0xff]  }
 0x1cc   :  { %1350 = vmatpush3.bf16.msra.mxu0 %v1482_v38  ;;  %v1493_v38 = vld [vmem:[#allocation17 + $0x30] sm:$0xff]  }
 0x1cd   :  { %v466_v36 = vrot.slane %v459_v33, %v423_v19  ;;  %1351 = vmatprep.subr.bf16.mxu0 %v1858_v52  ;;  %v1489_v33 = vld [vmem:[%s2113_s10 + $0x10] sm:$0xff]  }
 0x1cf   :  { %v468_v37 = vsub.f32 %v447_v34, %v466_v36  ;;  %v1260_v34 = vld [vmem:[#allocation13] ss:$0 sm:$0xff] }
 0x1d0   :  { %1352 = vmatpush3.bf16.msra.mxu0 %v1483_v53  ;;  %v1494_v53 = vld [vmem:[#allocation17 + $0x28] sm:$0xff]  }
 0x1d1   :  { %v477_v40 = vrot.slane %v468_v37, %v441_v26  ;;  %v473_v42 = vrot.slane %v468_v37, %v2033_v25  ;;  %1353 = vmatprep.subr.bf16.mxu0 %v1858_v52 }
 0x1d3   :  { %v481_v43 = vadd.f32 %v477_v40, %v446_v39  ;;  %v480_v44 = vadd.f32 %v473_v42, %v445_v41 }
 0x1d4   :  { %1354 = vmatpush3.bf16.msra.mxu0 %v1484_v54  ;;  %v1495_v54 = vld [vmem:[#allocation17 + $0x20] sm:$0xff]  }
 0x1d5   :  { %vm483_vm0 = vcmp.gt.f32.partialorder %v481_v43, 0.0  ;;  %v485_v45 = vmul.f32 0.2, %v481_v43  ;;  %vm482_vm1 = vcmp.gt.f32.partialorder %v480_v44, 0.0  ;;  %v484_v46 = vmul.f32 0.2, %v480_v44  ;;  %1355 = vmatprep.subr.bf16.mxu0 %v1858_v52 }
 0x1d7   :  { %v487_v47 = vsel %vm483_vm0, %v481_v43, %v485_v45  ;;  %v486_v48 = vsel %vm482_vm1, %v480_v44, %v484_v46  ;;  %v1490_v43 = vld [vmem:[%s2113_s10 + $0x8] sm:$0xff]   ;;  %v1491_v45 = vld [vmem:[%s2113_s10] sm:$0xff]   ;;  %s1860_s10 = smov [#allocation25]  }
 0x1d8   :  { %v489_v49 = vpack.c.bf16 %v487_v47, %v487_v47  ;;  %v488_v50 = vpack.c.bf16 %v486_v48, %v486_v48  ;;  %1356 = vmatpush3.bf16.msra.mxu0 %v1485_v55  ;;  %v813_v47 = vld [vmem:[%s2130_s28] sm:$0xff] }
 0x1d9   :  { %1357 = vmatprep.subr.bf16.mxu0 %v1858_v52  ;;  %v1496_v55 = vld [vmem:[#allocation17 + $0x18] sm:$0xff]  }
 0x1da   :  { %650 = vmatprep.mubr.bf16.mxu1 %v489_v49 }
 0x1db   :  { %651 = vmatmul.mubr.bf16.vlgmr.msra.gmra.mxu1 %v488_v50 }
 0x1dc   :  { %1358 = vmatpush3.bf16.msra.mxu0 %v1486_v56  ;;  %1373 = vmatprep.mubr.msk.bf16.mxu1 %vm1859_vm2, %v1858_v52  ;;  %v1497_v56 = vld [vmem:[#allocation17 + $0x10] sm:$0xff]  }
 0x1dd   :  { %1359 = vmatprep.subr.bf16.mxu0 %v1858_v52  ;;  %1366 = vmatpush3.bf16.msra.mxu1 %v1488_v32  ;;  %v1500_v32 = vld [vmem:[#allocation22 + $0x38] sm:$0xff]  }
 0x1de   :  { %1367 = vmatprep.subr.bf16.mxu1 %v1858_v52 }
 0x1e0   :  { %1360 = vmatpush3.bf16.msra.mxu0 %v1487_v57  ;;  %v1498_v57 = vld [vmem:[#allocation17 + $0x8] sm:$0xff]  }
 0x1e1   :  { %1397 = vmatprep.subr.bf16.mxu0 %v1858_v52  ;;  %1368 = vmatpush3.bf16.msra.mxu1 %v1489_v33  ;;  %v1501_v33 = vld [vmem:[#allocation22 + $0x30] sm:$0xff]  }
 0x1e2   :  { %1369 = vmatprep.subr.bf16.mxu1 %v1858_v52 }
 0x1e5   :  { %1370 = vmatpush3.bf16.msra.mxu1 %v1490_v43 }
 0x1e6   :  { %1371 = vmatprep.subr.bf16.mxu1 %v1858_v52 }
 0x1e9   :  { %1372 = vmatpush3.bf16.msra.mxu1 %v1491_v45 }
 0x1ea   :  { %1377 = vmatprep.subr.bf16.mxu1 %v1858_v52 }
 0x29b   :  { %v1307_v58 = vpop.f32.mrf.mxu1 }
 0x29d   :  { %v1308_v59 = vpop.f32.mrf.mxu1 }
 0x29e   :  { %v1309_v60 = vadd.f32 %v1308_v59, %v1307_v58  ;;  %v1499_v58 = vld [vmem:[#allocation17] sm:$0xff]  }
 0x29f   :  { %v1310_v61 = vpop.f32.mrf.mxu1 }
 0x2a0   :  { %v658_v62 = vrot.slane %v1309_v60, 4  ;;  %v664_v63 = vmul.f32 %v1309_v60, %v1309_v60 }
 0x2a1   :  { %v1311_v0 = vpop.f32.mrf.mxu1 }
 0x2a2   :  { %v659_v1 = vadd.f32 %v1309_v60, %v658_v62  ;;  %v665_v2 = vrot.slane %v664_v63, 4 }
 0x2a4   :  { %v660_v3 = vrot.slane %v659_v1, 2  ;;  %v666_v4 = vadd.f32 %v665_v2, %v664_v63 }
 0x2a6   :  { %v661_v5 = vadd.f32 %v660_v3, %v659_v1  ;;  %v667_v6 = vrot.slane %v666_v4, 2 }
 0x2a8   :  { %v662_v7 = vrot.slane %v661_v5, 1  ;;  %v668_v8 = vadd.f32 %v667_v6, %v666_v4 }
 0x2aa   :  { %v663_v9 = vadd.f32 %v662_v7, %v661_v5  ;;  %v669_v10 = vrot.slane %v668_v8, 1 }
 0x2ac   :  { %v670_v11 = vadd.f32 %v669_v10, %v668_v8  ;;  %v671_v12 = vmul.f32 0.125, %v663_v9 }
 0x2ae   :  { %v672_v13 = vmul.f32 0.125, %v670_v11  ;;  %v673_v14 = vmul.f32 %v671_v12, %v671_v12 }
 0x2b0   :  { %v674_v15 = vsub.f32 %v672_v13, %v673_v14 }
 0x2b2   :  { %v675_v16 = vmax.f32 %v674_v15, 0.0 }
 0x2b4   :  { %v677_v17 = vadd.f32 1e-05, %v675_v16 }
 0x2b6   :  { %1512 = vrsqrt.f32 %v677_v17 }
 0x2c3   :  { %v1513_v19 = vpop.eup %1512 }
 0x2c4   :  { %v679_v20 = vmul.f32 %v1513_v19, %v676_v18  ;;  %v918_v18 = vld [vmem:[#allocation14] sm:$0x1] }
 0x2c6   :  { %v684_v22 = vrot.slane %v679_v20, %v2033_v25  ;;  %v688_v23 = vmul.f32 %v679_v20, %v671_v12 }
 0x2c8   :  { %v689_v24 = vsub.f32 %v687_v21, %v688_v23  ;;  %v686_v26 = vmul.f32 %v1309_v60, %v684_v22  ;;  %v929_v21 = vld [vmem:[#allocation16] sm:$0x1] }
 0x2ca   :  { %v694_v27 = vrot.slane %v689_v24, %v2033_v25 }
 0x2cc   :  { %v696_v28 = vadd.f32 %v694_v27, %v686_v26 }
 0x2ce   :  { %vm697_vm3 = vcmp.gt.f32.partialorder %v696_v28, 0.0  ;;  %v698_v29 = vmul.f32 0.2, %v696_v28 }
 0x2d0   :  { %v699_v30 = vsel %vm697_vm3, %v696_v28, %v698_v29 }
 0x2d1   :  { %v700_v31 = vpack.c.bf16 %v699_v30, %v699_v30 }
 0x2d3   :  { %1362 = vmatmul.mubr.bf16.vlgmr.msra.gmra.mxu0 %v700_v31 }
 0x2d4   :  { %1413 = vmatprep.mubr.msk.bf16.mxu0 %vm1859_vm2, %v1858_v52  ;;  %1398 = vmatpush3.bf16.msra.mxu0 %v1500_v32 }
 0x2d5   :  { %1399 = vmatprep.subr.bf16.mxu0 %v1858_v52 }
 0x2d8   :  { %1400 = vmatpush3.bf16.msra.mxu0 %v1501_v33 }
 0x2d9   :  { %1401 = vmatprep.subr.bf16.mxu0 %v1858_v52 }
 0x393   :  { %v806_v36 = vpop.f32.mrf.mxu0 }
 0x394   :  { %v807_v37 = vadd.f32 %v1260_v34, %v806_v36  ;;  %v1502_v34 = vld [vmem:[#allocation22 + $0x28] sm:$0xff]   ;;  %v1503_v36 = vld [vmem:[#allocation22 + $0x20] sm:$0xff]  }
 0x395   :  { %v1363_v39 = vpop.f32.mrf.mxu0  ;;  %1402 = vmatpush3.bf16.msra.mxu0 %v1502_v34 }
 0x396   :  { %812 = vst [vmem:[%s2122_s19] sm:$0xff] %v807_v37  ;;  %v814_v40 = vmul.f32 0.5, %v807_v37  ;;  %1403 = vmatprep.subr.bf16.mxu0 %v1858_v52  ;;  %v1505_v39 = vld [vmem:[#allocation22 + $0x10] sm:$0xff]  }
 0x397   :  { %v809_v41 = vpop.f32.mrf.mxu0 }
 0x398   :  { %v815_v42 = vmul.f32 1.442695, %v814_v40  ;;  %v1506_v40 = vld [vmem:[#allocation22 + $0x8] sm:$0xff]   ;;  %v1507_v41 = vld [vmem:[#allocation22] sm:$0xff]  }
 0x399   :  { %v1364_v44 = vpop.f32.mrf.mxu0  ;;  %1404 = vmatpush3.bf16.msra.mxu0 %v1503_v36 }
 0x39a   :  { %1514 = vpow2.f32 %v815_v42  ;;  %1405 = vmatprep.subr.bf16.mxu0 %v1858_v52 }
 0x3a7   :  { %v1515_v46 = vpop.eup %1514 }
 0x3a8   :  { %818 = vrot.lane.b32.xlu0 %v1515_v46, %s1842_s4  ;;  %s1208_s4 = sshll.u32 %s1860_s10, 4  ;;  %s1209_s4 = int_to_ptr.vmem [resolvable:$true] %s1208_s4 }
 0x3a9   :  { %s1800_s29 = scalar_lea.vmem %s1209_s4, 128  ;;  %p1805_p1 = scmp.lt.s32.totalorder %s1209_s4, %s1209_s4 }
 0x3aa   :  { %p1801_p0 = scmp.ne.s32.totalorder %s1209_s4, %s1800_s29  ;;  %p1806_p2 = scmp.lt.s32.totalorder %s1800_s29, %s1800_s29 }
 0x3ac   :  { %p1807_p3 = por %p1806_p2, %p1805_p1 }
 0x3ae   :  { %p1808_p4 = pnand %p1807_p3, %p1801_p0 }
 0x41a   :  { %v819_v48 = vpop.permute.xlu0 %818 }
 0x41b   :  { %v821_v49 = vmul.f32 %v819_v48, %v813_v47 }
 0x41d   :  { %v822_v50 = vadd.f32 %v821_v49, %v807_v37  ;;  %v1504_v37 = vld [vmem:[#allocation22 + $0x18] sm:$0xff]  }
 0x41e   :  { %1406 = vmatpush3.bf16.msra.mxu0 %v1504_v37 }
 0x41f   :  { %v823_v51 = vpack.c.bf16 %v822_v50, %v822_v50  ;;  %1407 = vmatprep.subr.bf16.mxu0 %v1858_v52 }
 0x421   :  { %1374 = vmatmul.mubr.msk.bf16.vlgmr.msra.gmra.mxu1 %vm856_vm4, %v823_v51 }
 0x422   :  { %1393 = vmatprep.mubr.msk.bf16.mxu1 %vm1859_vm2, %v1858_v52  ;;  %1378 = vmatpush3.bf16.msra.mxu1 %v1492_v35 }
 0x423   :  { %1379 = vmatprep.subr.bf16.mxu1 %v1858_v52  ;;  %1408 = vmatpush3.bf16.msra.mxu0 %v1505_v39 }
 0x424   :  { %1409 = vmatprep.subr.bf16.mxu0 %v1858_v52 }
 0x426   :  { %1380 = vmatpush3.bf16.msra.mxu1 %v1493_v38 }
 0x427   :  { %1381 = vmatprep.subr.bf16.mxu1 %v1858_v52  ;;  %1410 = vmatpush3.bf16.msra.mxu0 %v1506_v40 }
 0x428   :  { %1411 = vmatprep.subr.bf16.mxu0 %v1858_v52 }
 0x42a   :  { %1382 = vmatpush3.bf16.msra.mxu1 %v1494_v53 }
 0x42b   :  { %1383 = vmatprep.subr.bf16.mxu1 %v1858_v52  ;;  %1412 = vmatpush3.bf16.msra.mxu0 %v1507_v41 }
 0x42e   :  { %1384 = vmatpush3.bf16.msra.mxu1 %v1495_v54 }
 0x42f   :  { %1385 = vmatprep.subr.bf16.mxu1 %v1858_v52 }
 0x432   :  { %1386 = vmatpush3.bf16.msra.mxu1 %v1496_v55 }
 0x433   :  { %1387 = vmatprep.subr.bf16.mxu1 %v1858_v52 }
 0x436   :  { %1388 = vmatpush3.bf16.msra.mxu1 %v1497_v56 }
 0x437   :  { %1389 = vmatprep.subr.bf16.mxu1 %v1858_v52 }
 0x43a   :  { %1390 = vmatpush3.bf16.msra.mxu1 %v1498_v57 }
 0x43b   :  { %1391 = vmatprep.subr.bf16.mxu1 %v1858_v52 }
 0x43e   :  { %1392 = vmatpush3.bf16.msra.mxu1 %v1499_v58 }
 0x4e1   :  { %v894_v59 = vpop.f32.mrf.mxu1 }
 0x4e2   :  { %v900_v60 = vrot.slane %v894_v59, 4  ;;  %v906_v61 = vmul.f32 %v894_v59, %v894_v59 }
 0x4e3   :  { %v1375_v62 = vpop.f32.mrf.mxu1 }
 0x4e4   :  { %v901_v63 = vadd.f32 %v900_v60, %v894_v59  ;;  %v907_v0 = vrot.slane %v906_v61, 4 }
 0x4e5   :  { %v897_v1 = vpop.f32.mrf.mxu1 }
 0x4e6   :  { %v902_v2 = vrot.slane %v901_v63, 2  ;;  %v908_v3 = vadd.f32 %v907_v0, %v906_v61 }
 0x4e7   :  { %v1376_v4 = vpop.f32.mrf.mxu1 }
 0x4e8   :  { %v903_v5 = vadd.f32 %v902_v2, %v901_v63  ;;  %v909_v6 = vrot.slane %v908_v3, 2  ;;  %v1065_v63 = vld [vmem:[#allocation19] sm:$0x1]  ;;  %v1076_v2 = vld [vmem:[#allocation20] sm:$0x1] }
 0x4ea   :  { %v904_v7 = vrot.slane %v903_v5, 1  ;;  %v910_v8 = vadd.f32 %v909_v6, %v908_v3 }
 0x4ec   :  { %v905_v9 = vadd.f32 %v904_v7, %v903_v5  ;;  %v911_v10 = vrot.slane %v910_v8, 1 }
 0x4ee   :  { %v912_v11 = vadd.f32 %v911_v10, %v910_v8  ;;  %v913_v12 = vmul.f32 0.125, %v905_v9 }
 0x4f0   :  { %v914_v13 = vmul.f32 0.125, %v912_v11  ;;  %v915_v14 = vmul.f32 %v913_v12, %v913_v12 }
 0x4f2   :  { %v916_v15 = vsub.f32 %v914_v13, %v915_v14 }
 0x4f4   :  { %v917_v16 = vmax.f32 %v916_v15, 0.0 }
 0x4f6   :  { %v919_v17 = vadd.f32 1e-05, %v917_v16 }
 0x4f8   :  { %1516 = vrsqrt.f32 %v919_v17 }
 0x505   :  { %v1517_v19 = vpop.eup %1516 }
 0x506   :  { %v921_v20 = vmul.f32 %v1517_v19, %v918_v18 }
 0x508   :  { %v926_v22 = vrot.slane %v921_v20, %v2033_v25  ;;  %v930_v23 = vmul.f32 %v921_v20, %v913_v12  ;;  %v1282_v12 = vld [vmem:[#allocation23] ss:$0 sm:$0xff] }
 0x50a   :  { %v931_v24 = vsub.f32 %v929_v21, %v930_v23  ;;  %v928_v26 = vmul.f32 %v926_v22, %v894_v59 }
 0x50c   :  { %v936_v27 = vrot.slane %v931_v24, %v2033_v25 }
 0x50e   :  { %v938_v28 = vadd.f32 %v936_v27, %v928_v26 }
 0x510   :  { %vm939_vm5 = vcmp.gt.f32.partialorder %v938_v28, 0.0  ;;  %v940_v29 = vmul.f32 0.2, %v938_v28 }
 0x512   :  { %v941_v30 = vsel %vm939_vm5, %v938_v28, %v940_v29 }
 0x513   :  { %v942_v31 = vpack.c.bf16 %v941_v30, %v941_v30 }
 0x515   :  { %1394 = vmatmul.mubr.bf16.vlgmr.msra.gmra.mxu1 %v942_v31 }
 0x5d5   :  { %v1041_v42 = vpop.f32.mrf.mxu1 }
 0x5d6   :  { %v1047_v43 = vrot.slane %v1041_v42, 4  ;;  %v1053_v44 = vmul.f32 %v1041_v42, %v1041_v42 }
 0x5d7   :  { %v1395_v45 = vpop.f32.mrf.mxu1 }
 0x5d8   :  { %v1048_v46 = vadd.f32 %v1047_v43, %v1041_v42  ;;  %v1054_v47 = vrot.slane %v1053_v44, 4 }
 0x5d9   :  { %v1044_v48 = vpop.f32.mrf.mxu1 }
 0x5da   :  { %v1049_v49 = vrot.slane %v1048_v46, 2  ;;  %v1055_v50 = vadd.f32 %v1054_v47, %v1053_v44 }
 0x5db   :  { %v1396_v51 = vpop.f32.mrf.mxu1 }
 0x5dc   :  { %v1050_v35 = vadd.f32 %v1049_v49, %v1048_v46  ;;  %v1056_v38 = vrot.slane %v1055_v50, 2 }
 0x5de   :  { %v1051_v53 = vrot.slane %v1050_v35, 1  ;;  %v1057_v54 = vadd.f32 %v1056_v38, %v1055_v50 }
 0x5e0   :  { %v1052_v55 = vadd.f32 %v1051_v53, %v1050_v35  ;;  %v1058_v56 = vrot.slane %v1057_v54, 1 }
 0x5e2   :  { %v1059_v57 = vadd.f32 %v1058_v56, %v1057_v54  ;;  %v1060_v58 = vmul.f32 0.125, %v1052_v55 }
 0x5e4   :  { %v1061_v52 = vmul.f32 0.125, %v1059_v57  ;;  %v1062_v59 = vmul.f32 %v1060_v58, %v1060_v58 }
 0x5e6   :  { %v1063_v60 = vsub.f32 %v1061_v52, %v1062_v59 }
 0x5e8   :  { %v1064_v61 = vmax.f32 %v1063_v60, 0.0 }
 0x5ea   :  { %v1066_v62 = vadd.f32 1e-05, %v1064_v61 }
 0x5ec   :  { %1518 = vrsqrt.f32 %v1066_v62 }
 0x5f9   :  { %v1519_v0 = vpop.eup %1518 }
 0x5fa   :  { %v1068_v1 = vmul.f32 %v1519_v0, %v1065_v63 }
 0x5fc   :  { %v1073_v3 = vrot.slane %v1068_v1, %v2033_v25  ;;  %v1077_v4 = vmul.f32 %v1068_v1, %v1060_v58 }
 0x5fe   :  { %v1078_v5 = vsub.f32 %v1076_v2, %v1077_v4  ;;  %v1075_v6 = vmul.f32 %v1073_v3, %v1041_v42 }
 0x600   :  { %v1083_v7 = vrot.slane %v1078_v5, %v2033_v25 }
 0x602   :  { %v1085_v8 = vadd.f32 %v1083_v7, %v1075_v6 }
 0x604   :  { %vm1086_vm6 = vcmp.gt.f32.partialorder %v1085_v8, 0.0  ;;  %v1087_v9 = vmul.f32 0.2, %v1085_v8 }
 0x606   :  { %v1088_v10 = vsel %vm1086_vm6, %v1085_v8, %v1087_v9 }
 0x607   :  { %v1089_v11 = vpack.c.bf16 %v1088_v10, %v1088_v10 }
 0x609   :  { %1414 = vmatmul.mubr.bf16.vlgmr.msra.gmra.mxu0 %v1089_v11 }
 0x6c9   :  { %v1195_v13 = vpop.f32.mrf.mxu0 }
 0x6ca   :  { %v1196_v14 = vadd.f32 %v1282_v12, %v1195_v13 }
 0x6cb   :  { %v1415_v15 = vpop.f32.mrf.mxu0 }
 0x6cc   :  { %1201 = vst [vmem:[#allocation25] sm:$0xff] %v1196_v14 }
 0x6cd   :  { %v1198_v16 = vpop.f32.mrf.mxu0 }
 0x6ce   :  { %1811 = shalt.err (!%p1808_p4)
}
 0x6cf   :  { %1211 = dma.vmem_to_hbm [thread:$0]  %s1209_s4, 128, %s2121_s18, [#allocation4]   ;;  %v1416_v25 = vpop.f32.mrf.mxu0 }
 0x6d0   :  { %1836 = dma.done.wait [#allocation4], 128  }
 0x6d1   :  { %1837 = vsyncadd [#allocation4], 4294967168 }
 0x6d2   :  { %1219 = vsyncpa [#allocation3], 1 }
 0x6d3   :  { %1220 = vsyncpa [#allocation6], 1 }
 0x6d4   :  { %1221 = vsyncpa [#allocation9], 1 }
 0x6d5   :  { %1222 = vsyncpa [#allocation12], 1 }
 0x6d6   :  { %1223 = vsyncpa [#allocation15], 1 }
 0x6d7   :  { %1224 = vsyncpa [#allocation18], 1 }
 0x6d8   :  { %1225 = vsyncpa [#allocation21], 1 }
 0x6d9   :  { %1226 = vsyncpa [#allocation24], 1 }
 0x6da   :  { %1227 = vsyncpa [#allocation4], 1 }

</bundles_post_ra>
